<compile_context>
chip_gen: v5e
topology: v5e:2x2
jax: 0.10.0
libtpu: 0.0.40
codegen_flags: <defaults>
</compile_context>

<pallas_src>
import functools

import jax
import jax.numpy as jnp
from jax.experimental import pallas as pl
from jax.experimental.pallas import tpu as pltpu

LANE = 128


def _dice_kernel(x_ref, t_ref, num_ref, den_ref, num_acc, den_acc, *,
                 p, rows, bpc, full_blocks, r_valid, need_mask):
    """Grid = (chunks [parallel], blocks-per-chunk [arbitrary/reduction])."""
    k = pl.program_id(1)

    @pl.when(k == 0)
    def _init():
        num_acc[...] = jnp.zeros(num_acc.shape, num_acc.dtype)
        den_acc[...] = jnp.zeros(den_acc.shape, den_acc.dtype)

    pred = jax.nn.sigmoid(x_ref[...].astype(jnp.float32))    # (B, rows, 128)
    tgt = t_ref[...].astype(jnp.float32)                      # (B, rows, 128)

    if p == 2:
        pred_p = pred * pred
        tgt_p = tgt * tgt
    elif p == 1:
        pred_p = pred
        tgt_p = tgt
    else:
        pred_p = pred ** p
        tgt_p = tgt ** p

    num_c = pred * tgt
    den_c = pred_p + tgt_p

    if need_mask:
        blk = pl.program_id(0) * bpc + k

        # Slow path: only the ragged tail block (and, on an uneven dual-core
        # split, the clamped/duplicated overshoot block) pays for the
        # iota/compare/where.  jnp.where zeroes BOTH num and den
        # contributions of out-of-range rows (garbage values, possibly
        # NaN/Inf, are never propagated by the select).
        @pl.when(blk >= full_blocks)
        def _edge():
            row_ids = jax.lax.broadcasted_iota(jnp.int32, num_c.shape, 1)
            valid = (blk * rows + row_ids) < r_valid
            num_acc[...] += jnp.sum(jnp.where(valid, num_c, 0.0), axis=1)
            den_acc[...] += jnp.sum(jnp.where(valid, den_c, 0.0), axis=1)

        @pl.when(blk < full_blocks)
        def _fast():
            num_acc[...] += jnp.sum(num_c, axis=1)
            den_acc[...] += jnp.sum(den_c, axis=1)
    else:
        # Per-block sublane reduction (XLU) into a tiny (B, 128) accumulator.
        num_acc[...] += jnp.sum(num_c, axis=1)
        den_acc[...] += jnp.sum(den_c, axis=1)

    @pl.when(k == pl.num_programs(1) - 1)
    def _finalize():
        num_ref[0] = num_acc[...]      # (B, 128) partial; lanes summed outside
        den_ref[0] = den_acc[...]


def _num_tensorcores_per_chip():
    """Best-effort TC-per-chip detection; 1 is always a safe fallback."""
    try:
        kind = jax.devices()[0].device_kind.lower()
    except Exception:
        return 1
    if any(s in kind for s in ("lite", "v5e", "v6e", "v6 ")):
        return 1
    if any(s in kind for s in ("v4", "v5p", "v7")):
        return 2
    return 1


def _vmem_capacity_bytes():
    try:
        return int(pltpu.get_tpu_info().vmem_capacity_bytes)
    except Exception:
        return 64 * 1024 * 1024   # conservative (v7x per-TC physical VMEM)


def binary_dice_loss(x, target, *, smooth=1, p=2, reduction="mean",
                     target_block_bytes=1536 * 1024):
    """Pallas implementation of BinaryDiceLoss.forward (NCHW or any shape)."""
    del smooth  # defined in __init__ but never used in the PyTorch forward
    assert x.shape[0] == target.shape[0], "predict & target batch size don't match"
    B = x.shape[0]
    xf = x.reshape(B, -1)
    tf = target.reshape(B, -1)
    N = xf.shape[1]

    # Lane alignment: only pad when N is not a multiple of 128.  Padded logits
    # of -1e4 give sigmoid()==0 exactly (stable or naive lowering), padded
    # targets are 0, so padding contributes nothing to num or den.
    pad = (-N) % LANE
    if pad:
        xf = jnp.pad(xf, ((0, 0), (0, pad)), constant_values=-1e4)
        tf = jnp.pad(tf, ((0, 0), (0, pad)), constant_values=0)
    Np = N + pad
    R = Np // LANE

    # Free, layout-preserving reshape to a sublane/lane-dense 3-D view.
    x3 = xf.reshape(B, R, LANE)
    t3 = tf.reshape(B, R, LANE)

    isz_x = jnp.dtype(x3.dtype).itemsize
    isz_t = jnp.dtype(t3.dtype).itemsize
    # Sub-32-bit dtypes pack sublanes in pairs/quads: round rows to the native
    # sublane multiple of the narrowest input dtype.
    sub_mult = max(8, 32 // min(isz_x, isz_t))

    # VMEM budget: 2 double-buffered input blocks (+ tiny acc/out) must fit
    # comfortably under the chip's VMEM capacity.
    phys_vmem = _vmem_capacity_bytes()
    budget = (phys_vmem * 3) // 4
    row_bytes_both = B * LANE * (isz_x + isz_t)      # one row of x-block + t-block
    max_rows_budget = max(sub_mult, (budget - (2 << 20)) // (2 * row_bytes_both))

    tgt_rows = max(sub_mult, target_block_bytes // (B * LANE * max(isz_x, isz_t)))
    tgt_rows = min(tgt_rows, max_rows_budget)
    if tgt_rows >= R:
        rows = R                                  # full dim (allowed even if not % sub_mult)
    else:
        rows = max(sub_mult, (tgt_rows // sub_mult) * sub_mult)

    total_blocks = pl.cdiv(R, rows)
    # Dual-TC chips (v4/v5p/v7x): split the reduction across 2 chunks whenever
    # there are >= 2 blocks (odd counts handled by clamp + mask).  Single-TC
    # chips keep 1 chunk: no extra init/finalize or partial writeback.
    cores = _num_tensorcores_per_chip()
    num_chunks = 2 if (cores >= 2 and total_blocks >= 2) else 1
    bpc = pl.cdiv(total_blocks, num_chunks)
    full_blocks = R // rows                       # blocks fully inside the valid rows
    need_mask = (num_chunks * bpc * rows != R)

    if num_chunks * bpc > total_blocks:
        # Uneven split: clamp the overshoot block to a valid index; its
        # contribution is zeroed by the in-kernel row mask.
        def in_map(c, k):
            return (0, jnp.minimum(c * bpc + k, total_blocks - 1), 0)
    else:
        def in_map(c, k):
            return (0, c * bpc + k, 0)

    kernel = functools.partial(_dice_kernel, p=p, rows=rows, bpc=bpc,
                               full_blocks=full_blocks, r_valid=R,
                               need_mask=need_mask)

    # Approximate VMEM footprint: 2 buffers x (x block + t block) + acc + out.
    needed = (2 * rows * row_bytes_both
              + 2 * B * LANE * 4            # accumulators
              + 2 * 2 * B * LANE * 4        # output double buffers
              + (1 << 20))
    vmem_limit = int(min(phys_vmem - (2 << 20), max(needed + (4 << 20), 32 << 20)))

    part_shape = jax.ShapeDtypeStruct((num_chunks, B, LANE), jnp.float32)
    out_spec = pl.BlockSpec((1, B, LANE), lambda c, k: (c, 0, 0))
    in_spec = pl.BlockSpec((B, rows, LANE), in_map)

    num_part, den_part = pl.pallas_call(
        kernel,
        out_shape=(part_shape, part_shape),
        grid_spec=pltpu.PrefetchScalarGridSpec(
            num_scalar_prefetch=0,
            grid=(num_chunks, bpc),
            in_specs=[in_spec, in_spec],
            out_specs=(out_spec, out_spec),
            scratch_shapes=[
                pltpu.VMEM((B, LANE), jnp.float32),   # num accumulator
                pltpu.VMEM((B, LANE), jnp.float32),   # den accumulator
            ],
        ),
        compiler_params=pltpu.CompilerParams(
            dimension_semantics=("parallel", "arbitrary"),
            vmem_limit_bytes=vmem_limit,
        ),
    )(x3, t3)

    # Tiny finalize on (num_chunks, B, 128) partials.
    num = jnp.sum(num_part, axis=(0, 2))          # (B,)
    den = jnp.sum(den_part, axis=(0, 2))          # (B,)
    loss = 1.0 - 2.0 * num / den                  # den==0 -> NaN, same as torch

    if reduction == "mean":
        return jnp.mean(loss)
    elif reduction == "sum":
        return jnp.sum(loss)
    elif reduction == "none":
        return loss
    else:
        raise Exception("Unexpected reduction {}".format(reduction))


def _reference(x, target, p=2, reduction="mean"):
    B = x.shape[0]
    pred = jax.nn.sigmoid(x.astype(jnp.float32)).reshape(B, -1)
    tgt = target.astype(jnp.float32).reshape(B, -1)
    num = jnp.sum(pred * tgt, axis=1)
    den = jnp.sum(pred ** p + tgt ** p, axis=1)
    loss = 1.0 - 2.0 * num / den
    if reduction == "mean":
        return jnp.mean(loss)
    if reduction == "sum":
        return jnp.sum(loss)
    return loss


if __name__ == "__main__":
    key = jax.random.PRNGKey(0)
    k1, k2, k3, k4, k5, k6 = jax.random.split(key, 6)

    # Case 1: lane-aligned NCHW input, 'mean' reduction (single block, fast path).
    B, C, H, W = 2, 4, 16, 16
    x = jax.random.normal(k1, (B, C, H, W), dtype=jnp.float32)
    t = (jax.random.uniform(k2, (B, C, H, W)) > 0.5).astype(jnp.float32)
    out = jax.block_until_ready(
        binary_dice_loss(x, t, smooth=1, p=2, reduction="mean"))
    ref = _reference(x, t, p=2, reduction="mean")
    assert jnp.allclose(out, ref, rtol=1e-5, atol=1e-5), (out, ref)

    # Case 2: ragged feature count + small blocks -> exercises lane padding,
    # the pl.when-gated edge-block mask, and (on dual-TC chips) the clamped
    # overshoot block of an uneven 2-chunk split; 'none' reduction.
    B2, C2, H2, W2 = 2, 1, 52, 52
    x2 = jax.random.normal(k3, (B2, C2, H2, W2), dtype=jnp.float32)
    t2 = (jax.random.uniform(k4, (B2, C2, H2, W2)) > 0.5).astype(jnp.float32)
    out2 = jax.block_until_ready(
        binary_dice_loss(x2, t2, p=2, reduction="none",
                         target_block_bytes=8 * 1024))
    ref2 = _reference(x2, t2, p=2, reduction="none")
    assert jnp.allclose(out2, ref2, rtol=1e-5, atol=1e-5), (out2, ref2)

    # Case 3: bf16 logits/targets (halved HBM traffic path), multi-block fast
    # path with 16-row sublane alignment; 'sum' reduction.
    B3, C3, H3, W3 = 4, 2, 32, 64
    x3_ = jax.random.normal(k5, (B3, C3, H3, W3), dtype=jnp.bfloat16)
    t3_ = (jax.random.uniform(k6, (B3, C3, H3, W3)) > 0.5).astype(jnp.bfloat16)
    out3 = jax.block_until_ready(
        binary_dice_loss(x3_, t3_, p=2, reduction="sum",
                         target_block_bytes=8 * 1024))
    ref3 = _reference(x3_, t3_, p=2, reduction="sum")
    assert jnp.allclose(out3, ref3, rtol=1e-4, atol=1e-4), (out3, ref3)

    print("KERNEL_OK")
</pallas_src>

<mosaic_0001>
module attributes {stable_mosaic.version = 11 : i64} {
  func.func @_dice_kernel(%arg0: i32, %arg1: i32, %arg2: memref<2x8x128xf32, #tpu.memory_space<vmem>>, %arg3: memref<2x8x128xf32, #tpu.memory_space<vmem>>, %arg4: memref<1x2x128xf32, #tpu.memory_space<vmem>>, %arg5: memref<1x2x128xf32, #tpu.memory_space<vmem>>, %arg6: memref<2x128xf32, #tpu.memory_space<vmem>>, %arg7: memref<2x128xf32, #tpu.memory_space<vmem>>) attributes {dimension_semantics = [#tpu.dimension_semantics<parallel>, #tpu.dimension_semantics<arbitrary>], iteration_bounds = array<i64: 1, 1>, scalar_prefetch = 0 : i64, scratch_operands = 2 : i64, tpu.core_type = #tpu.core_type<tc>, window_params = [{transform_indices = @transform_0, window_bounds = array<i64: 2, 8, 128>}, {transform_indices = @transform_1, window_bounds = array<i64: 2, 8, 128>}, {transform_indices = @transform_2, window_bounds = array<i64: 1, 2, 128>}, {transform_indices = @transform_3, window_bounds = array<i64: 1, 2, 128>}]} {
    %c0_i32 = arith.constant 0 : i32
    %0 = arith.cmpi eq, %arg1, %c0_i32 : i32
    %1 = arith.extui %0 : i1 to i32
    %c0_i32_0 = arith.constant 0 : i32
    %2 = arith.cmpi ne, %1, %c0_i32_0 : i32
    scf.if %2 {
      %cst_18 = arith.constant 0.000000e+00 : f32
      %25 = vector.broadcast %cst_18 : f32 to vector<2x128xf32>
      %c0_19 = arith.constant 0 : index
      %c0_20 = arith.constant 0 : index
      %26 = vector.load %arg6[%c0_19, %c0_20] : memref<2x128xf32, #tpu.memory_space<vmem>>, vector<2x128xf32>
      tpu.vector_store %arg6[%c0_19, %c0_20], %25 {strides = array<i32>} : memref<2x128xf32, #tpu.memory_space<vmem>>, vector<2x128xf32>,
      %cst_21 = arith.constant 0.000000e+00 : f32
      %27 = vector.broadcast %cst_21 : f32 to vector<2x128xf32>
      %c0_22 = arith.constant 0 : index
      %c0_23 = arith.constant 0 : index
      %28 = vector.load %arg7[%c0_22, %c0_23] : memref<2x128xf32, #tpu.memory_space<vmem>>, vector<2x128xf32>
      tpu.vector_store %arg7[%c0_22, %c0_23], %27 {strides = array<i32>} : memref<2x128xf32, #tpu.memory_space<vmem>>, vector<2x128xf32>,
    } else {
    }
    %c0 = arith.constant 0 : index
    %c0_1 = arith.constant 0 : index
    %c0_2 = arith.constant 0 : index
    %3 = vector.load %arg2[%c0, %c0_1, %c0_2] : memref<2x8x128xf32, #tpu.memory_space<vmem>>, vector<2x8x128xf32>
    %4 = arith.negf %3 : vector<2x8x128xf32>
    %5 = math.exp %4 : vector<2x8x128xf32>
    %cst = arith.constant 1.000000e+00 : f32
    %6 = vector.broadcast %cst : f32 to vector<2x8x128xf32>
    %7 = arith.addf %6, %5 : vector<2x8x128xf32>
    %8 = arith.divf %6, %7 : vector<2x8x128xf32>
    %c0_3 = arith.constant 0 : index
    %c0_4 = arith.constant 0 : index
    %c0_5 = arith.constant 0 : index
    %9 = vector.load %arg3[%c0_3, %c0_4, %c0_5] : memref<2x8x128xf32, #tpu.memory_space<vmem>>, vector<2x8x128xf32>
    %10 = arith.mulf %8, %8 : vector<2x8x128xf32>
    %11 = arith.mulf %9, %9 : vector<2x8x128xf32>
    %12 = arith.mulf %8, %9 : vector<2x8x128xf32>
    %13 = arith.addf %10, %11 : vector<2x8x128xf32>
    %c0_6 = arith.constant 0 : index
    %c0_7 = arith.constant 0 : index
    %14 = vector.load %arg6[%c0_6, %c0_7] : memref<2x128xf32, #tpu.memory_space<vmem>>, vector<2x128xf32>
    %cst_8 = arith.constant dense<0.000000e+00> : vector<2x128xf32>
    %15 = vector.multi_reduction <add>, %12, %cst_8 [1] : vector<2x8x128xf32> to vector<2x128xf32>
    %16 = arith.addf %14, %15 : vector<2x128xf32>
    %c0_9 = arith.constant 0 : index
    %c0_10 = arith.constant 0 : index
    %17 = vector.load %arg6[%c0_9, %c0_10] : memref<2x128xf32, #tpu.memory_space<vmem>>, vector<2x128xf32>
    tpu.vector_store %arg6[%c0_9, %c0_10], %16 {strides = array<i32>} : memref<2x128xf32, #tpu.memory_space<vmem>>, vector<2x128xf32>,
    %c0_11 = arith.constant 0 : index
    %c0_12 = arith.constant 0 : index
    %18 = vector.load %arg7[%c0_11, %c0_12] : memref<2x128xf32, #tpu.memory_space<vmem>>, vector<2x128xf32>
    %cst_13 = arith.constant dense<0.000000e+00> : vector<2x128xf32>
    %19 = vector.multi_reduction <add>, %13, %cst_13 [1] : vector<2x8x128xf32> to vector<2x128xf32>
    %20 = arith.addf %18, %19 : vector<2x128xf32>
    %c0_14 = arith.constant 0 : index
    %c0_15 = arith.constant 0 : index
    %21 = vector.load %arg7[%c0_14, %c0_15] : memref<2x128xf32, #tpu.memory_space<vmem>>, vector<2x128xf32>
    tpu.vector_store %arg7[%c0_14, %c0_15], %20 {strides = array<i32>} : memref<2x128xf32, #tpu.memory_space<vmem>>, vector<2x128xf32>,
    %c0_i32_16 = arith.constant 0 : i32
    %22 = arith.cmpi eq, %arg1, %c0_i32_16 : i32
    %23 = arith.extui %22 : i1 to i32
    %c0_i32_17 = arith.constant 0 : i32
    %24 = arith.cmpi ne, %23, %c0_i32_17 : i32
    scf.if %24 {
      %c0_18 = arith.constant 0 : index
      %c0_19 = arith.constant 0 : index
      %25 = vector.load %arg6[%c0_18, %c0_19] : memref<2x128xf32, #tpu.memory_space<vmem>>, vector<2x128xf32>
      %c0_20 = arith.constant 0 : index
      %c0_21 = arith.constant 0 : index
      %c0_22 = arith.constant 0 : index
      %26 = vector.load %arg4[%c0_20, %c0_21, %c0_22] : memref<1x2x128xf32, #tpu.memory_space<vmem>>, vector<1x2x128xf32>
      %27 = vector.shape_cast %26 : vector<1x2x128xf32> to vector<2x128xf32>
      %28 = vector.shape_cast %25 : vector<2x128xf32> to vector<1x2x128xf32>
      tpu.vector_store %arg4[%c0_20, %c0_21, %c0_22], %28 {strides = array<i32>} : memref<1x2x128xf32, #tpu.memory_space<vmem>>, vector<1x2x128xf32>,
      %c0_23 = arith.constant 0 : index
      %c0_24 = arith.constant 0 : index
      %29 = vector.load %arg7[%c0_23, %c0_24] : memref<2x128xf32, #tpu.memory_space<vmem>>, vector<2x128xf32>
      %c0_25 = arith.constant 0 : index
      %c0_26 = arith.constant 0 : index
      %c0_27 = arith.constant 0 : index
      %30 = vector.load %arg5[%c0_25, %c0_26, %c0_27] : memref<1x2x128xf32, #tpu.memory_space<vmem>>, vector<1x2x128xf32>
      %31 = vector.shape_cast %30 : vector<1x2x128xf32> to vector<2x128xf32>
      %32 = vector.shape_cast %29 : vector<2x128xf32> to vector<1x2x128xf32>
      tpu.vector_store %arg5[%c0_25, %c0_26, %c0_27], %32 {strides = array<i32>} : memref<1x2x128xf32, #tpu.memory_space<vmem>>, vector<1x2x128xf32>,
    } else {
    }
    return
  }
  func.func @transform_0(%arg0: i32, %arg1: i32) -> (i32, i32, i32) {
    %c1_i32 = arith.constant 1 : i32
    %0 = arith.muli %arg0, %c1_i32 : i32
    %1 = arith.addi %0, %arg1 : i32
    %c0_i32 = arith.constant 0 : i32
    %c0_i32_0 = arith.constant 0 : i32
    %c0_i32_1 = arith.constant 0 : i32
    return %c0_i32, %1, %c0_i32_0 : i32, i32, i32
  }
  func.func @transform_1(%arg0: i32, %arg1: i32) -> (i32, i32, i32) {
    %c1_i32 = arith.constant 1 : i32
    %0 = arith.muli %arg0, %c1_i32 : i32
    %1 = arith.addi %0, %arg1 : i32
    %c0_i32 = arith.constant 0 : i32
    %c0_i32_0 = arith.constant 0 : i32
    %c0_i32_1 = arith.constant 0 : i32
    return %c0_i32, %1, %c0_i32_0 : i32, i32, i32
  }
  func.func @transform_2(%arg0: i32, %arg1: i32) -> (i32, i32, i32) {
    %c0_i32 = arith.constant 0 : i32
    %c0_i32_0 = arith.constant 0 : i32
    %c0_i32_1 = arith.constant 0 : i32
    return %arg0, %c0_i32, %c0_i32_0 : i32, i32, i32
  }
  func.func @transform_3(%arg0: i32, %arg1: i32) -> (i32, i32, i32) {
    %c0_i32 = arith.constant 0 : i32
    %c0_i32_0 = arith.constant 0 : i32
    %c0_i32_1 = arith.constant 0 : i32
    return %arg0, %c0_i32, %c0_i32_0 : i32, i32, i32
  }
}

</mosaic_0001>

<bundles_post_ra>
// kernel: tpu_custom_call.1
= control target key start
LH: loop header
LB: loop body
LE: loop exit
PB: predicated region body
PF: predicated region fallthrough
CT: control target
= control target key end

     0   :  { %9 = vsyncpa [#allocation5], 0  ;;  %s351_s0 = inlined_call_operand.hbm [shape: f32[2,8,128], index: 0, kind: input, shape index: {}]   ;;  %s352_s1 = inlined_call_operand.hbm [shape: f32[2,8,128], index: 1, kind: input, shape index: {}]   ;;  %s353_s2 = inlined_call_operand.hbm [shape: f32[1,2,128], index: 2, kind: output, shape index: {0}]   ;;  %s354_s3 = inlined_call_operand.hbm [shape: f32[1,2,128], index: 3, kind: output, shape index: {1}]  }
   0x1   :  { %10 = vsyncpa [#allocation8], 0 }
   0x2   :  { %11 = vsyncpa [#allocation6], 0 }
   0x3   :  { %12 = vsyncpa [#allocation11], 0  ;;  %s20_s14 = sshll.u32 %s351_s0, 4  ;;  %s312_s15 = smov [#allocation4]   ;;  %s21_s14 = int_to_ptr.hbm [resolvable:$true] %s20_s14 }
   0x4   :  { %s22_s16 = sshll.u32 %s312_s15, 4  ;;  %s36_s19 = sshll.u32 %s352_s1, 4  ;;  %s23_s16 = int_to_ptr.vmem [resolvable:$true] %s22_s16  ;;  %s37_s19 = int_to_ptr.hbm [resolvable:$true] %s36_s19 }
   0x5   :  { %s313_s20 = smov 128   ;;  %s314_s21 = smov 8  }
   0x6   :  { %28 = dma.hbm_to_vmem [thread:$0]  %s21_s14, 256, %s23_s16, [#allocation5], %s313_s20, %s313_s20, %s314_s21  }
   0x7   :  { %s315_s22 = smov [#allocation7]  }
   0x8   :  { %s38_s23 = sshll.u32 %s315_s22, 4  ;;  %s39_s23 = int_to_ptr.vmem [resolvable:$true] %s38_s23 }
   0x9   :  { %44 = dma.hbm_to_vmem [thread:$0]  %s37_s19, 256, %s39_s23, [#allocation8], %s313_s20, %s313_s20, %s314_s21  }
   0xa   :  { %304 = dma.done.wait [#allocation5], 256  }
   0xb   :  { %305 = vsyncadd [#allocation5], 4294967040 }
   0xc   :  { %306 = dma.done.wait [#allocation8], 256  }
   0xd   :  { %307 = vsyncadd [#allocation8], 4294967040  ;;  %v316_v0 = vmov 0.0   ;;  %v61_v1 = vld [vmem:[#allocation4] sm:$0xff]  ;;  %v62_v2 = vld [vmem:[#allocation4 + $0x8] sm:$0xff]  ;;  %vm126_vm8 = vcmask 1041409  }
   0xe   :  { %59 = vst [vmem:[#allocation2] sm:$0x3] %v316_v0  ;;  %v191_v3 = vmul.f32 -1.442695, %v61_v1  ;;  %v192_v4 = vmul.f32 -1.442695, %v62_v2 }
   0xf   :  { %60 = vst [vmem:[#allocation3] sm:$0x3] %v316_v0  ;;  %v101_v22 = vld [vmem:[#allocation7] sm:$0xff]  ;;  %v102_v25 = vld [vmem:[#allocation7 + $0x8] sm:$0xff]  ;;  %s317_s0 = smov [#allocation9]   ;;  %s164_s26 = sshll.u32 %s353_s2, 4  ;;  %s165_s26 = int_to_ptr.hbm [resolvable:$true] %s164_s26 }
  0x10   :  { %200 = vpow2.f32 %v191_v3  ;;  %v105_v28 = vmul.f32 %v101_v22, %v101_v22  ;;  %v106_v31 = vmul.f32 %v102_v25, %v102_v25  ;;  %s162_s1 = sshll.u32 %s317_s0, 4  ;;  %s318_s27 = smov [#allocation10]   ;;  %s163_s1 = int_to_ptr.vmem [resolvable:$true] %s162_s1 }
  0x11   :  { %202 = vpow2.f32 %v192_v4  ;;  %s173_s28 = sshll.u32 %s318_s27, 4  ;;  %s175_s4 = sshll.u32 %s354_s3, 4  ;;  %s174_s28 = int_to_ptr.vmem [resolvable:$true] %s173_s28  ;;  %s176_s4 = int_to_ptr.hbm [resolvable:$true] %s175_s4 }
  0x15   :  { %v111_v59 = vld [vmem:[#allocation2] sm:$0x3] }
  0x16   :  { %v201_v5 = vpop.eup %200  ;;  %v131_v0 = vld [vmem:[#allocation3] sm:$0x3] }
  0x17   :  { %v203_v6 = vpop.eup %202  ;;  %v69_v7 = vadd.f32 1.0, %v201_v5 }
  0x18   :  { %v70_v8 = vadd.f32 1.0, %v203_v6 }
  0x19   :  { %204 = vrcp.f32 %v69_v7  ;;  %vm76_vm0 = vweird.f32 %v69_v7  ;;  %v82_v12 = vand.u32 2147483648, %v69_v7  ;;  %v80_v15 = vand.u32 2147483647, %v69_v7 }
  0x1a   :  { %206 = vrcp.f32 %v70_v8  ;;  %v97_v16 = vand.u32 2147483648, %v70_v8  ;;  %vm91_vm2 = vweird.f32 %v70_v8  ;;  %v95_v18 = vand.u32 2147483647, %v70_v8 }
  0x1b   :  { %v83_v20 = vor.u32 1.1754944e-38, %v82_v12  ;;  %vm81_vm5 = vcmp.eq.f32.partialorder %v80_v15, 8.507059e+37 }
  0x1c   :  { %v98_v24 = vor.u32 1.1754944e-38, %v97_v16  ;;  %vm96_vm7 = vcmp.eq.f32.partialorder %v95_v18, 8.507059e+37 }
  0x1f   :  { %v205_v9 = vpop.eup %204 }
  0x20   :  { %v207_v10 = vpop.eup %206  ;;  %v72_v11 = vmul.f32 %v205_v9, %v69_v7  ;;  %vm77_vm1 = vweird.f32 %v205_v9 }
  0x21   :  { %v87_v13 = vmul.f32 %v207_v10, %v70_v8  ;;  %vm92_vm3 = vweird.f32 %v207_v10  ;;  %vm78_vm4 = vmor %vm76_vm0, %vm77_vm1 }
  0x22   :  { %v73_v14 = vsub.f32 1.0, %v72_v11  ;;  %vm93_vm6 = vmor %vm91_vm2, %vm92_vm3 }
  0x23   :  { %v88_v17 = vsub.f32 1.0, %v87_v13 }
  0x24   :  { %v74_v19 = vmul.f32 %v205_v9, %v73_v14 }
  0x25   :  { %v89_v21 = vmul.f32 %v207_v10, %v88_v17 }
  0x26   :  { %v75_v23 = vadd.f32 %v205_v9, %v74_v19 }
  0x27   :  { %v90_v26 = vadd.f32 %v207_v10, %v89_v21 }
  0x28   :  { %v79_v27 = vsel %vm78_vm4, %v205_v9, %v75_v23 }
  0x29   :  { %v84_v29 = vsel %vm81_vm5, %v83_v20, %v79_v27  ;;  %v94_v30 = vsel %vm93_vm6, %v207_v10, %v90_v26 }
  0x2a   :  { %v99_v32 = vsel %vm96_vm7, %v98_v24, %v94_v30  ;;  %v107_v33 = vmul.f32 %v101_v22, %v84_v29  ;;  %v103_v34 = vmul.f32 %v84_v29, %v84_v29 }
  0x2b   :  { %v108_v35 = vmul.f32 %v102_v25, %v99_v32  ;;  %v104_v36 = vmul.f32 %v99_v32, %v99_v32 }
  0x2c   :  { %v112_v37 = vrot.slane %v107_v33, 4  ;;  %v109_v38 = vadd.f32 %v105_v28, %v103_v34 }
  0x2d   :  { %v118_v39 = vrot.slane %v108_v35, 4  ;;  %v110_v40 = vadd.f32 %v106_v31, %v104_v36 }
  0x2e   :  { %v113_v41 = vadd.f32 %v112_v37, %v107_v33  ;;  %v132_v42 = vrot.slane %v109_v38, 4 }
  0x2f   :  { %v119_v43 = vadd.f32 %v118_v39, %v108_v35  ;;  %v138_v44 = vrot.slane %v110_v40, 4 }
  0x30   :  { %v114_v45 = vrot.slane %v113_v41, 2  ;;  %v133_v46 = vadd.f32 %v132_v42, %v109_v38 }
  0x31   :  { %v120_v47 = vrot.slane %v119_v43, 2  ;;  %v139_v48 = vadd.f32 %v138_v44, %v110_v40 }
  0x32   :  { %v115_v49 = vadd.f32 %v114_v45, %v113_v41  ;;  %v134_v50 = vrot.slane %v133_v46, 2 }
  0x33   :  { %v121_v51 = vadd.f32 %v120_v47, %v119_v43  ;;  %v140_v52 = vrot.slane %v139_v48, 2 }
  0x34   :  { %v116_v53 = vrot.slane %v115_v49, 1  ;;  %v135_v54 = vadd.f32 %v134_v50, %v133_v46 }
  0x35   :  { %v122_v55 = vrot.slane %v121_v51, 1  ;;  %v141_v56 = vadd.f32 %v140_v52, %v139_v48 }
  0x36   :  { %v117_v57 = vadd.f32 %v116_v53, %v115_v49  ;;  %v136_v58 = vrot.slane %v135_v54, 1 }
  0x37   :  { %v123_v60 = vadd.f32 %v122_v55, %v121_v51  ;;  %v142_v61 = vrot.slane %v141_v56, 1 }
  0x38   :  { %v137_v62 = vadd.f32 %v136_v58, %v135_v54 }
  0x39   :  { %v127_v63 = vsel %vm126_vm8, %v123_v60, %v117_v57  ;;  %v143_v1 = vadd.f32 %v142_v61, %v141_v56 }
  0x3a   :  { %v129_v2 = vadd.f32 %v127_v63, %v111_v59 }
  0x3b   :  { %v146_v3 = vsel %vm126_vm8, %v143_v1, %v137_v62 }
  0x3c   :  { %130 = vst [vmem:[#allocation2] sm:$0x3] %v129_v2  ;;  %v148_v4 = vadd.f32 %v146_v3, %v131_v0 }
  0x3e   :  { %149 = vst [vmem:[#allocation3] sm:$0x3] %v148_v4 }
  0x43   :  { %v153_v5 = vld [vmem:[#allocation2] sm:$0x3] }
  0x44   :  { %154 = vst [vmem:[#allocation9] sm:$0x3] %v153_v5 }
  0x45   :  { %v155_v6 = vld [vmem:[#allocation3] sm:$0x3]  ;;  %167 = dma.vmem_to_hbm [thread:$0]  %s163_s1, 32, %s165_s26, [#allocation6]  }
  0x46   :  { %156 = vst [vmem:[#allocation10] sm:$0x3] %v155_v6 }
  0x47   :  { %178 = dma.vmem_to_hbm [thread:$0]  %s174_s28, 32, %s176_s4, [#allocation11]  }
  0x48   :  { %308 = dma.done.wait [#allocation6], 32  }
  0x49   :  { %309 = vsyncadd [#allocation6], 4294967264 }
  0x4a   :  { %310 = dma.done.wait [#allocation11], 32  }
  0x4b   :  { %311 = vsyncadd [#allocation11], 4294967264 }
  0x4c   :  { %187 = vsyncpa [#allocation5], 1 }
  0x4d   :  { %188 = vsyncpa [#allocation8], 1 }
  0x4e   :  { %189 = vsyncpa [#allocation6], 1 }
  0x4f   :  { %190 = vsyncpa [#allocation11], 1 }

</bundles_post_ra>
